<compile_context>
chip_gen: v5e
topology: v5e:2x2
jax: 0.10.0
libtpu: 0.0.40
codegen_flags: <defaults>
</compile_context>

<pallas_src>
import jax
import jax.numpy as jnp
from jax.experimental import pallas as pl
from jax.experimental.pallas import tpu as pltpu


# ----------------------------------------------------------------------------
# Kernel: one grid step == SummaRuNNer.forward() for one sentence index.
# ----------------------------------------------------------------------------
def _summarunner_doc_kernel(slab_ref,   # (1, b, 2H+2P)  [s | abs_emb | rel_emb]
                            d_ref,      # (b, 2H)        document representation
                            r0_ref,     # (b, 2H)        initial running summary
                            wcat_ref,   # (2H, 4H)       [W_salience | W_novelty]
                            wcra_ref,   # (1, 2H+2P)     [w_content | w_abs | w_rel]
                            probs_ref,  # (S, b, 1)      per-sentence probabilities
                            rfin_ref,   # (b, 2H)        final running summary
                            r_acc):     # VMEM scratch   running summary carry
    i = pl.program_id(1)                       # sentence index within document
    h2 = d_ref.shape[-1]                       # 2 * hidden_size

    @pl.when(i == 0)
    def _init():
        r_acc[...] = r0_ref[...]

    slab = slab_ref[0]                         # (b, 2H + 2P)
    s = slab[:, :h2]                           # (b, 2H) sentence hidden states
    d = d_ref[...]
    r = r_acc[...]
    tanh_r = jnp.tanh(r)

    # salience - novelty: one lane-dense MXU dot against [Ws | Wn], then one
    # 128-lane rowsum against [d | -tanh(r)].
    cat = jnp.dot(s.astype(wcat_ref.dtype), wcat_ref[...],
                  preferred_element_type=jnp.float32)              # (b, 4H)
    mult = jnp.concatenate([d, -tanh_r], axis=-1)                  # (b, 4H)
    sal_minus_nov = jnp.sum(cat * mult, axis=-1, keepdims=True)    # (b, 1)

    # content + abs_pos + rel_pos importances: VPU broadcast-mul + lane reduce
    # (a single fused (1, 2H+2P) weight row; no N=1 MXU matvecs).
    car = jnp.sum(slab * wcra_ref[...], axis=-1, keepdims=True)    # (b, 1)

    p = jax.nn.sigmoid(car + sal_minus_nov)                        # (b, 1)
    probs_ref[i] = p

    # Canonical SummaRuNNer caller-loop carry: r_{i+1} = r_i + p_i * s_i.
    r_acc[...] = r + p * s

    @pl.when(i == pl.num_programs(1) - 1)
    def _finalize():
        rfin_ref[...] = r_acc[...]


# ----------------------------------------------------------------------------
# Wrapper: fused forward over all sentences of a batch of documents.
# ----------------------------------------------------------------------------
def summarunner_document_forward(params, sentence_hidden_states,
                                 running_summary, document_lengths,
                                 document_representations, *,
                                 first_index=0, mxu_dtype=jnp.float32,
                                 batch_block=None):
    """Returns (probabilities (S, B, 1), final running summary (B, 2H)).

    Each grid step reproduces SummaRuNNer.forward(s_i, first_index + i, r_i,
    document_lengths, D) and carries r_{i+1} = r_i + p_i * s_i.
    """
    s_all = sentence_hidden_states.astype(jnp.float32)   # (S, B, 2H)
    d = document_representations.astype(jnp.float32)     # (B, 2H)
    r0 = running_summary.astype(jnp.float32)              # (B, 2H)
    doc_len = document_lengths

    S, B, H2 = s_all.shape
    pos_size, P = params["abs_pos_embedding"].shape
    F = H2 + 2 * P

    b_blk = B if batch_block is None else batch_block
    assert B % b_blk == 0, "batch must be divisible by batch_block"

    # --- one-time glue: position indices + one batched embedding gather -----
    abs_idx = first_index + jnp.arange(S, dtype=jnp.int32)               # (S,)
    rel_idx = (abs_idx[:, None].astype(jnp.float32)
               / doc_len[None, :].astype(jnp.float32) * 10.0).astype(jnp.int32)
    # nn.Embedding would fault on out-of-range indices; clamp defensively.
    abs_idx = jnp.clip(abs_idx, 0, pos_size - 1)
    rel_idx = jnp.clip(rel_idx, 0, pos_size - 1)
    abs_emb = jnp.take(params["abs_pos_embedding"], abs_idx, axis=0)     # (S, P)
    rel_emb = jnp.take(params["rel_pos_embedding"], rel_idx, axis=0)     # (S, B, P)
    abs_emb = jnp.broadcast_to(abs_emb[:, None, :], (S, B, P))

    # Per-step slab [s | abs_emb | rel_emb] -> (S, B, 2H + 2P).  With the
    # default sizes (H=32, P=32) the feature axis is exactly 128 lanes.
    slab = jnp.concatenate([s_all, abs_emb, rel_emb], axis=-1)

    # Fused weights: one lane-dense bilinear weight and one (1, F) row for
    # the three rank-1 projections.
    w_cat = jnp.concatenate([params["w_salience"], params["w_novelty"]],
                            axis=1).astype(mxu_dtype)                    # (2H, 4H)
    w_cra = jnp.concatenate([params["w_content"], params["w_abs_pos"],
                             params["w_rel_pos"]], axis=0).T             # (1, F)
    w_cra = w_cra.astype(jnp.float32)

    grid = (B // b_blk, S)

    in_specs = [
        pl.BlockSpec((1, b_blk, F), lambda j, i: (i, j, 0)),     # slab (per step)
        pl.BlockSpec((b_blk, H2), lambda j, i: (j, 0)),          # d (resident)
        pl.BlockSpec((b_blk, H2), lambda j, i: (j, 0)),          # r0 (resident)
        pl.BlockSpec((H2, 2 * H2), lambda j, i: (0, 0)),         # [Ws|Wn] (resident)
        pl.BlockSpec((1, F), lambda j, i: (0, 0)),               # [wc|wa|wr] row
    ]
    out_specs = (
        pl.BlockSpec((S, b_blk, 1), lambda j, i: (0, j, 0)),     # probs (resident over i)
        pl.BlockSpec((b_blk, H2), lambda j, i: (j, 0)),          # final running summary
    )
    out_shape = (
        jax.ShapeDtypeStruct((S, B, 1), jnp.float32),
        jax.ShapeDtypeStruct((B, H2), jnp.float32),
    )

    probs, r_final = pl.pallas_call(
        _summarunner_doc_kernel,
        out_shape=out_shape,
        grid=grid,
        in_specs=in_specs,
        out_specs=out_specs,
        scratch_shapes=[pltpu.VMEM((b_blk, H2), jnp.float32)],
        compiler_params=pltpu.CompilerParams(
            dimension_semantics=("parallel", "arbitrary")),
    )(slab, d, r0, w_cat, w_cra)
    return probs, r_final


def summarunner_step(params, sentence_hidden_states, index, running_summary,
                     document_lengths, document_representations, *,
                     mxu_dtype=jnp.float32):
    """Drop-in equivalent of SummaRuNNer.forward() for a single sentence index."""
    probs, _ = summarunner_document_forward(
        params, sentence_hidden_states[None], running_summary,
        document_lengths, document_representations,
        first_index=index, mxu_dtype=mxu_dtype)
    return probs[0]


# ----------------------------------------------------------------------------
# Deterministic parameters (shapes per the module's __init__, bias=False).
# ----------------------------------------------------------------------------
def make_params(key, hidden_size, position_size, position_embedding_size):
    h2 = 2 * hidden_size
    p = position_embedding_size
    ks = jax.random.split(key, 7)
    u = lambda k, shape: jax.random.uniform(k, shape, jnp.float32, -0.1, 0.1)
    return {
        "abs_pos_embedding": u(ks[0], (position_size, p)),
        "rel_pos_embedding": u(ks[1], (position_size, p)),
        "w_content": u(ks[2], (h2, 1)),        # nn.Linear(2H,1).weight^T
        "w_salience": u(ks[3], (h2, h2)),      # nn.Bilinear weight[0]
        "w_novelty": u(ks[4], (h2, h2)),       # nn.Bilinear weight[0]
        "w_abs_pos": u(ks[5], (p, 1)),         # nn.Linear(P,1).weight^T
        "w_rel_pos": u(ks[6], (p, 1)),         # nn.Linear(P,1).weight^T
    }


# ----------------------------------------------------------------------------
# Pure-JAX reference (mirrors the PyTorch module forward per step).
# ----------------------------------------------------------------------------
def _reference_step(params, s, index, r, doc_lens, d):
    B = s.shape[0]
    pos_size = params["abs_pos_embedding"].shape[0]
    abs_idx = jnp.full((B,), index, dtype=jnp.int32)
    rel_idx = (abs_idx.astype(jnp.float32)
               / doc_lens.astype(jnp.float32) * 10.0).astype(jnp.int32)
    abs_idx = jnp.clip(abs_idx, 0, pos_size - 1)
    rel_idx = jnp.clip(rel_idx, 0, pos_size - 1)
    ape = params["abs_pos_embedding"][abs_idx]
    rpe = params["rel_pos_embedding"][rel_idx]
    content = s @ params["w_content"]
    salience = jnp.sum((s @ params["w_salience"]) * d, -1, keepdims=True)
    novelty = jnp.sum((s @ params["w_novelty"]) * jnp.tanh(r), -1, keepdims=True)
    abs_imp = ape @ params["w_abs_pos"]
    rel_imp = rpe @ params["w_rel_pos"]
    return jax.nn.sigmoid(content + salience - novelty + abs_imp + rel_imp)


def _reference_document(params, s_all, r0, doc_lens, d):
    probs, r = [], r0
    for i in range(s_all.shape[0]):
        p = _reference_step(params, s_all[i], i, r, doc_lens, d)
        probs.append(p)
        r = r + p * s_all[i]
    return jnp.stack(probs, axis=0), r


if __name__ == "__main__":
    batch = 8
    hidden_size = 32              # bi-GRU hidden -> 2H = 64
    position_size = 64
    position_embedding_size = 32  # 2H + 2P = 128 (one full lane tile)
    num_sentences = 16

    key = jax.random.PRNGKey(0)
    k_par, k_s, k_d, k_len, k_r = jax.random.split(key, 5)
    params = make_params(k_par, hidden_size, position_size,
                         position_embedding_size)

    h2 = 2 * hidden_size
    s_all = jax.random.normal(k_s, (num_sentences, batch, h2), jnp.float32)
    doc_rep = jax.random.normal(k_d, (batch, h2), jnp.float32)
    doc_len = jax.random.randint(k_len, (batch,), 4, num_sentences + 1,
                                 jnp.int32)
    r0 = jnp.zeros((batch, h2), jnp.float32)

    # Fused document-level forward (f32) vs pure-JAX reference.
    probs, r_final = summarunner_document_forward(params, s_all, r0, doc_len,
                                                  doc_rep)
    probs, r_final = jax.block_until_ready((probs, r_final))
    ref_probs, ref_r = _reference_document(params, s_all, r0, doc_len, doc_rep)
    assert probs.shape == (num_sentences, batch, 1)
    # f32 reduction-order differences compound through the sequential
    # running-summary carry; 1e-3 on probabilities still catches real bugs.
    assert jnp.allclose(probs, ref_probs, atol=1e-3), "probs mismatch"
    assert jnp.allclose(r_final, ref_r, atol=1e-2), "running-summary mismatch"

    # Single-step forward (the module's exact signature), index = 3.
    index = 3
    r_any = jax.random.normal(k_r, (batch, h2), jnp.float32)
    p_step = summarunner_step(params, s_all[index], index, r_any, doc_len,
                              doc_rep)
    p_step = jax.block_until_ready(p_step)
    p_ref = _reference_step(params, s_all[index], index, r_any, doc_len,
                            doc_rep)
    assert p_step.shape == (batch, 1)
    assert jnp.allclose(p_step, p_ref, atol=1e-4), "single-step mismatch"

    # bf16 MXU operands (recommended on v6e/v7x); sanity-check it runs.
    probs_bf16, _ = summarunner_document_forward(
        params, s_all, r0, doc_len, doc_rep, mxu_dtype=jnp.bfloat16)
    probs_bf16 = jax.block_until_ready(probs_bf16)
    assert probs_bf16.shape == (num_sentences, batch, 1)
    assert bool(jnp.all(jnp.isfinite(probs_bf16)))
    assert bool(jnp.all((probs_bf16 >= 0.0) & (probs_bf16 <= 1.0)))

    print("KERNEL_OK")
</pallas_src>

<mosaic_0001>
module attributes {stable_mosaic.version = 11 : i64} {
  func.func @_summarunner_doc_kernel(%arg0: i32, %arg1: i32, %arg2: memref<1x8x128xf32, #tpu.memory_space<vmem>>, %arg3: memref<8x64xf32, #tpu.memory_space<vmem>>, %arg4: memref<8x64xf32, #tpu.memory_space<vmem>>, %arg5: memref<64x128xf32, #tpu.memory_space<vmem>>, %arg6: memref<1x128xf32, #tpu.memory_space<vmem>>, %arg7: memref<16x8x1xf32, #tpu.memory_space<vmem>>, %arg8: memref<8x64xf32, #tpu.memory_space<vmem>>, %arg9: memref<8x64xf32, #tpu.memory_space<vmem>>) attributes {dimension_semantics = [#tpu.dimension_semantics<parallel>, #tpu.dimension_semantics<arbitrary>], iteration_bounds = array<i64: 1, 16>, scalar_prefetch = 0 : i64, scratch_operands = 1 : i64, tpu.core_type = #tpu.core_type<tc>, window_params = [{transform_indices = @transform_0, window_bounds = array<i64: 1, 8, 128>}, {transform_indices = @transform_1, window_bounds = array<i64: 8, 64>}, {transform_indices = @transform_2, window_bounds = array<i64: 8, 64>}, {pipeline_mode = #tpu.pipeline_mode<synchronous>, transform_indices = @transform_3, window_bounds = array<i64: 64, 128>}, {pipeline_mode = #tpu.pipeline_mode<synchronous>, transform_indices = @transform_4, window_bounds = array<i64: 1, 128>}, {transform_indices = @transform_5, window_bounds = array<i64: 16, 8, 1>}, {transform_indices = @transform_6, window_bounds = array<i64: 8, 64>}]} {
    %c0_i32 = arith.constant 0 : i32
    %0 = arith.cmpi eq, %arg1, %c0_i32 : i32
    %1 = arith.extui %0 : i1 to i32
    %c0_i32_0 = arith.constant 0 : i32
    %2 = arith.cmpi ne, %1, %c0_i32_0 : i32
    scf.if %2 {
      %c0_20 = arith.constant 0 : index
      %c0_21 = arith.constant 0 : index
      %39 = vector.load %arg4[%c0_20, %c0_21] : memref<8x64xf32, #tpu.memory_space<vmem>>, vector<8x64xf32>
      %c0_22 = arith.constant 0 : index
      %c0_23 = arith.constant 0 : index
      %40 = vector.load %arg9[%c0_22, %c0_23] : memref<8x64xf32, #tpu.memory_space<vmem>>, vector<8x64xf32>
      tpu.vector_store %arg9[%c0_22, %c0_23], %39 {strides = array<i32>} : memref<8x64xf32, #tpu.memory_space<vmem>>, vector<8x64xf32>,
    } else {
    }
    %c0 = arith.constant 0 : index
    %c0_1 = arith.constant 0 : index
    %c0_2 = arith.constant 0 : index
    %3 = vector.load %arg2[%c0, %c0_1, %c0_2] : memref<1x8x128xf32, #tpu.memory_space<vmem>>, vector<1x8x128xf32>
    %4 = vector.shape_cast %3 : vector<1x8x128xf32> to vector<8x128xf32>
    %5 = vector.extract_strided_slice %4 {offsets = [0, 0], sizes = [8, 64], strides = [1, 1]} : vector<8x128xf32> to vector<8x64xf32>
    %c0_3 = arith.constant 0 : index
    %c0_4 = arith.constant 0 : index
    %6 = vector.load %arg3[%c0_3, %c0_4] : memref<8x64xf32, #tpu.memory_space<vmem>>, vector<8x64xf32>
    %c0_5 = arith.constant 0 : index
    %c0_6 = arith.constant 0 : index
    %7 = vector.load %arg9[%c0_5, %c0_6] : memref<8x64xf32, #tpu.memory_space<vmem>>, vector<8x64xf32>
    %8 = math.tanh %7 : vector<8x64xf32>
    %c0_7 = arith.constant 0 : index
    %c0_8 = arith.constant 0 : index
    %9 = vector.load %arg5[%c0_7, %c0_8] : memref<64x128xf32, #tpu.memory_space<vmem>>, vector<64x128xf32>
    %cst = arith.constant dense<0.000000e+00> : vector<8x128xf32>
    %10 = tpu.matmul %5, %9, %cst {dimension_numbers = #tpu.dot_dimension_numbers<[1], [0], [0], [1], [0, 0, 1, 1], [], []>} : vector<8x64xf32>, vector<64x128xf32>, vector<8x128xf32> -> vector<8x128xf32>
    %cst_9 = arith.constant 0.000000e+00 : f32
    %11 = vector.broadcast %cst_9 : f32 to vector<8x64xf32>
    %12 = arith.subf %11, %8 : vector<8x64xf32>
    %13 = tpu.concatenate %6, %12 in 1 : vector<8x64xf32>, vector<8x64xf32> -> vector<8x128xf32>
    %14 = arith.mulf %10, %13 : vector<8x128xf32>
    %cst_10 = arith.constant dense<0.000000e+00> : vector<8xf32>
    %15 = vector.multi_reduction <add>, %14, %cst_10 [1] : vector<8x128xf32> to vector<8xf32>
    %16 = vector.shape_cast %15 : vector<8xf32> to vector<8x1xf32>
    %c0_11 = arith.constant 0 : index
    %c0_12 = arith.constant 0 : index
    %17 = vector.load %arg6[%c0_11, %c0_12] : memref<1x128xf32, #tpu.memory_space<vmem>>, vector<1x128xf32>
    %18 = vector.broadcast %17 : vector<1x128xf32> to vector<8x128xf32>
    %19 = arith.mulf %4, %18 : vector<8x128xf32>
    %cst_13 = arith.constant dense<0.000000e+00> : vector<8xf32>
    %20 = vector.multi_reduction <add>, %19, %cst_13 [1] : vector<8x128xf32> to vector<8xf32>
    %21 = vector.shape_cast %20 : vector<8xf32> to vector<8x1xf32>
    %22 = arith.addf %21, %16 : vector<8x1xf32>
    %23 = arith.negf %22 : vector<8x1xf32>
    %24 = math.exp %23 : vector<8x1xf32>
    %cst_14 = arith.constant 1.000000e+00 : f32
    %25 = vector.broadcast %cst_14 : f32 to vector<8x1xf32>
    %26 = arith.addf %25, %24 : vector<8x1xf32>
    %27 = arith.divf %25, %26 : vector<8x1xf32>
    %28 = arith.index_cast %arg1 : i32 to index
    %c0_15 = arith.constant 0 : index
    %c0_16 = arith.constant 0 : index
    %29 = vector.load %arg7[%28, %c0_15, %c0_16] : memref<16x8x1xf32, #tpu.memory_space<vmem>>, vector<1x8x1xf32>
    %30 = vector.shape_cast %29 : vector<1x8x1xf32> to vector<8x1xf32>
    %31 = vector.shape_cast %27 : vector<8x1xf32> to vector<1x8x1xf32>
    tpu.vector_store %arg7[%28, %c0_15, %c0_16], %31 {strides = array<i32>} : memref<16x8x1xf32, #tpu.memory_space<vmem>>, vector<1x8x1xf32>,
    %32 = vector.broadcast %27 : vector<8x1xf32> to vector<8x64xf32>
    %33 = arith.mulf %32, %5 : vector<8x64xf32>
    %34 = arith.addf %7, %33 : vector<8x64xf32>
    %c0_17 = arith.constant 0 : index
    %c0_18 = arith.constant 0 : index
    %35 = vector.load %arg9[%c0_17, %c0_18] : memref<8x64xf32, #tpu.memory_space<vmem>>, vector<8x64xf32>
    tpu.vector_store %arg9[%c0_17, %c0_18], %34 {strides = array<i32>} : memref<8x64xf32, #tpu.memory_space<vmem>>, vector<8x64xf32>,
    %c15_i32 = arith.constant 15 : i32
    %36 = arith.cmpi eq, %arg1, %c15_i32 : i32
    %37 = arith.extui %36 : i1 to i32
    %c0_i32_19 = arith.constant 0 : i32
    %38 = arith.cmpi ne, %37, %c0_i32_19 : i32
    scf.if %38 {
      %c0_20 = arith.constant 0 : index
      %c0_21 = arith.constant 0 : index
      %39 = vector.load %arg9[%c0_20, %c0_21] : memref<8x64xf32, #tpu.memory_space<vmem>>, vector<8x64xf32>
      %c0_22 = arith.constant 0 : index
      %c0_23 = arith.constant 0 : index
      %40 = vector.load %arg8[%c0_22, %c0_23] : memref<8x64xf32, #tpu.memory_space<vmem>>, vector<8x64xf32>
      tpu.vector_store %arg8[%c0_22, %c0_23], %39 {strides = array<i32>} : memref<8x64xf32, #tpu.memory_space<vmem>>, vector<8x64xf32>,
    } else {
    }
    return
  }
  func.func @transform_0(%arg0: i32, %arg1: i32) -> (i32, i32, i32) {
    %c0_i32 = arith.constant 0 : i32
    %c0_i32_0 = arith.constant 0 : i32
    return %arg1, %arg0, %c0_i32 : i32, i32, i32
  }
  func.func @transform_1(%arg0: i32, %arg1: i32) -> (i32, i32) {
    %c0_i32 = arith.constant 0 : i32
    %c0_i32_0 = arith.constant 0 : i32
    return %arg0, %c0_i32 : i32, i32
  }
  func.func @transform_2(%arg0: i32, %arg1: i32) -> (i32, i32) {
    %c0_i32 = arith.constant 0 : i32
    %c0_i32_0 = arith.constant 0 : i32
    return %arg0, %c0_i32 : i32, i32
  }
  func.func @transform_3(%arg0: i32, %arg1: i32) -> (i32, i32) {
    %c0_i32 = arith.constant 0 : i32
    %c0_i32_0 = arith.constant 0 : i32
    %c0_i32_1 = arith.constant 0 : i32
    return %c0_i32, %c0_i32_0 : i32, i32
  }
  func.func @transform_4(%arg0: i32, %arg1: i32) -> (i32, i32) {
    %c0_i32 = arith.constant 0 : i32
    %c0_i32_0 = arith.constant 0 : i32
    %c0_i32_1 = arith.constant 0 : i32
    return %c0_i32, %c0_i32_0 : i32, i32
  }
  func.func @transform_5(%arg0: i32, %arg1: i32) -> (i32, i32, i32) {
    %c0_i32 = arith.constant 0 : i32
    %c0_i32_0 = arith.constant 0 : i32
    %c0_i32_1 = arith.constant 0 : i32
    return %c0_i32, %arg0, %c0_i32_0 : i32, i32, i32
  }
  func.func @transform_6(%arg0: i32, %arg1: i32) -> (i32, i32) {
    %c0_i32 = arith.constant 0 : i32
    %c0_i32_0 = arith.constant 0 : i32
    return %arg0, %c0_i32 : i32, i32
  }
}

</mosaic_0001>

<bundles_post_ra>
// kernel: tpu_custom_call.1
= control target key start
LH: loop header
LB: loop body
LE: loop exit
PB: predicated region body
PF: predicated region fallthrough
CT: control target
= control target key end

     0   :  { %12 = vsyncpa [#allocation4], 0  ;;  %s1103_s0 = inlined_call_operand.hbm [shape: f32[16,8,128], index: 0, kind: input, shape index: {}]   ;;  %s1104_s1 = inlined_call_operand.hbm [shape: f32[8,64], index: 1, kind: input, shape index: {}]   ;;  %s1105_s2 = inlined_call_operand.hbm [shape: f32[8,64], index: 2, kind: input, shape index: {}]   ;;  %s1106_s3 = inlined_call_operand.hbm [shape: f32[64,128], index: 3, kind: input, shape index: {}]   ;;  %s1107_s4 = inlined_call_operand.vmem [shape: f32[1,128], index: 4, kind: input, shape index: {}]   ;;  %s1108_s5 = inlined_call_operand.vmem [shape: f32[16,8,1], index: 5, kind: output, shape index: {0}]   ;;  %s1109_s6 = inlined_call_operand.hbm [shape: f32[8,64], index: 6, kind: output, shape index: {1}]  }
   0x1   :  { %14 = vsyncpa [#allocation4 + $0x1], 0 }
   0x2   :  { %15 = vsyncpa [#allocation7], 0 }
   0x3   :  { %16 = vsyncpa [#allocation10], 0 }
   0x4   :  { %17 = vsyncpa [#allocation5], 0  ;;  %s956_s21 = smov 0   ;;  %s958_s22 = smov 0  }
   0x5   :  { %s960_s23 = smov 0   ;;  %s962_s24 = smov 0  }
   0x6   :  { %s964_s25 = smov 0   ;;  %s966_s26 = smov 0  }
   0x7 LB: > { %s576_s27 = sadd.s32 4294967295, %s912_s26   ;;  %p57_p0 = scmp.ne.s32.totalorder %s896_s22, %s892_s21  ;;  %s912_s26 = sphi %s966_s26, %s23_s26   ;;  %s908_s25 = sphi %s964_s25, %s1118_s25   ;;  %s904_s24 = sphi %s962_s24, %s1117_s24   ;;  %s900_s23 = sphi %s960_s23, %s1116_s23   ;;  %s896_s22 = sphi %s958_s22, %s1115_s22   ;;  %s892_s21 = sphi %s956_s21, %s1114_s21  }
   0x8   : > { %p988_p1 = scmp.eq.s32.totalorder %s576_s27, 0  ;;  %p577_p2 = scmp.ge.s32.totalorder %s912_s26, 1 }
   0x9   : > { %p214_p3 = scmp.lt.s32.totalorder %s912_s26, 17  ;;  %s228_s8 = sshll.u32 %s1104_s1, 4  ;;  %s229_s8 = int_to_ptr.hbm [resolvable:$true] %s228_s8 }
   0xa   : > { %p996_p4 = por %p988_p1, %p57_p0  ;;  %s914_s10 = smov [#allocation6]  }
   0xb   : > { %p1003_p5 = pnand %p577_p2, %p214_p3  ;;  %s230_s11 = sshll.u32 %s914_s10, 4  ;;  %s231_s11 = int_to_ptr.vmem [resolvable:$true] %s230_s11 }
   0xc   : > { %s242_s14 = sshll.u32 %s1105_s2, 4  ;;  %s253_s18 = sshll.u32 %s1106_s3, 4  ;;  %s243_s14 = int_to_ptr.hbm [resolvable:$true] %s242_s14  ;;  %s254_s18 = int_to_ptr.hbm [resolvable:$true] %s253_s18 }
   0xd   : > { %p617_p6 = pneg %p1003_p5  ;;  %s915_s19 = smov [#allocation8]  }
   0xe   : > { %s244_s20 = sshll.u32 %s915_s19, 4  ;;  %s916_s21 = smov [#allocation9]   ;;  %s245_s20 = int_to_ptr.vmem [resolvable:$true] %s244_s20 }
   0xf   : > { %p1014_p7 = pnand %p617_p6, %p988_p1  ;;  %s255_s30 = sshll.u32 %s916_s21, 4  ;;  %s256_s30 = int_to_ptr.vmem [resolvable:$true] %s255_s30 }
  0x10   : > { %s917_s7 = smov 128   ;;  %s918_s10 = smov 8  }
  0x11   : > { %620 = dma.hbm_to_vmem [thread:$0]  (!%p1014_p7), %s229_s8, 128, %s231_s11, [#allocation7]  }
  0x12   : > { %623 = dma.hbm_to_vmem [thread:$0]  (!%p1014_p7), %s243_s14, 128, %s245_s20, [#allocation7]  }
  0x13   : > { %626 = dma.hbm_to_vmem [thread:$0]  (!%p1014_p7), %s254_s18, 1024, %s256_s30, [#allocation10], %s917_s7, %s917_s7, %s918_s10  }
  0x14   : > { %s44_s12 = sadd.s32 1, %s900_s23  ;;  %s32_s13 = sadd.s32 1, %s908_s25 }
  0x15   : > { %p51_p8 = scmp.ne.s32.totalorder %s900_s23, %s896_s22  ;;  %p33_p9 = scmp.ge.s32.totalorder %s32_s13, 16 }
  0x16   : > { %p52_p10 = scmp.eq.s32.totalorder %s912_s26, 0  ;;  %p634_p11 = scmp.lt.s32.totalorder %s912_s26, 16 }
  0x17   : > { %s272_s8 = sand.u32 1, %s900_s23   ;;  %s1120_s13 = smov (%p33_p9, %s32_s13), 0 }
  0x18   : > { %p53_p12 = por %p52_p10, %p51_p8  ;;  %s39_s11 = ssub.s32 %s908_s25, %s1120_s13 }
  0x19   : > { %s582_s14 = sshll.u32 %s272_s8, 3  ;;  %p42_p13 = scmp.eq.s32.totalorder %s39_s11, 0 }
  0x1a   : > { %s583_s16 = sshll.u32 %s908_s25, 3  ;;  %s276_s17 = scalar_lea.vmem [#allocation3], %s582_s14 }
  0x1b   : > { %s285_s15 = sshll.u32 %s276_s17, 4  ;;  %s281_s21 = scalar_lea.hbm %s1103_s0, %s583_s16  ;;  %s286_s15 = int_to_ptr.vmem [resolvable:$true] %s285_s15 }
  0x1c   : > { %s1040_s18 = scalar_select %p42_p13, %s900_s23, %s44_s12  }
  0x1d   : > { %s283_s30 = sshll.u32 %s281_s21, 4  ;;  %p628_p0 = pnand %p634_p11, %p53_p12  ;;  %s284_s30 = int_to_ptr.hbm [resolvable:$true] %s283_s30 }
  0x1e   : > { %s273_s7 = scalar_lea.sflag [#allocation4], %s272_s8  ;;  %294 = sbr.rel (%p1003_p5) target bundleno = 358 (0x166), region = 40 }
  0x1f   : > { %630 = dma.hbm_to_vmem [thread:$0]  (!%p628_p0), %s284_s30, 128, %s286_s15, %s273_s7  }
  0x20   : > { %s296_s10 = sand.u32 (!%p1003_p5), 1, %s896_s22  }
  0x21   : > { %s1050_s11 = sshll.u32 (!%p1003_p5), %s296_s10, 3  ;;  %s297_s12 = scalar_lea.sflag (!%p1003_p5), [#allocation4], %s296_s10 }
  0x22   : > { %s300_s14 = scalar_lea.vmem (!%p1003_p5), [#allocation3], %s1050_s11 }
  0x23   : > { %875 = dma.done.wait (%p996_p4), %s297_s12, 128  }
  0x24   : > { %877 = vsyncadd (%p996_p4), %s297_s12, 4294967168 }
  0x25   : > { %879 = dma.done.wait (%p988_p1), [#allocation7], 256  }
  0x26   : > { %881 = vsyncadd (%p988_p1), [#allocation7], 4294967040 }
  0x27   : > { %883 = dma.done.wait (%p988_p1), [#allocation10], 1024  }
  0x28   : > { %885 = vsyncadd (%p988_p1), [#allocation10], 4294966272  ;;  %p589_p2 = scmp.ne.s32.totalorder %s904_s24, 0 }
  0x2a   : > { %351 = sbr.rel (%p589_p2) target bundleno = 49 (0x31), region = 60 }
  0x2f   : > { %v352_v0 = vld [vmem:[#allocation8] sm:$0xff]  ;;  %vm353_vm0 = vcmask 523264  }
  0x30   : > { %354 = vst.msk [vmem:[#allocation2] sm:$0xff] %vm353_vm0, %v352_v0 }
  0x31 PF: > { %v366_v1 = vld [vmem:[#allocation9 + $0x38] sm:$0xff]  ;;  %v365_v2 = vld [vmem:[#allocation9 + $0x30] sm:$0xff]  ;;  %v364_v3 = vld [vmem:[#allocation9 + $0x28] sm:$0xff]  ;;  %vm367_vm1 = vcmask 523264   ;;  %s919_s28 = smov 64   ;;  %s592_s8 = sshll.u32 %s904_s24, 3 }
  0x32   : > { %379 = vmatpush.msra.mxu0 %v366_v1  ;;  %v363_v5 = vld [vmem:[#allocation9 + $0x20] sm:$0xff]  ;;  %v362_v6 = vld [vmem:[#allocation9 + $0x18] sm:$0xff]  ;;  %v361_v7 = vld [vmem:[#allocation9 + $0x10] sm:$0xff]  ;;  %s428_s15 = scalar_lea.vmem %s1108_s5, %s592_s8  ;;  %vm429_vm4 = vcmask 7168   ;;  %p593_p1 = scmp.ne.s32.totalorder %s904_s24, 15 }
  0x33   : > { %v360_v9 = vld [vmem:[#allocation9 + $0x8] sm:$0xff]  ;;  %v359_v11 = vld [vmem:[#allocation9] sm:$0xff]  ;;  %v695_v13 = vld [vmem:[%s1107_s4] ss:$0 sm:$0xff] }
  0x34   : > { %380 = vmatpush.msra.mxu0 %v365_v2  ;;  %v355_v12 = vld [vmem:[%s300_s14] sm:$0xff]  ;;  %v356_v16 = vld [vmem:[#allocation6] sm:$0xff] }
  0x35   : > { %v404_v14 = vmul.f32 %v695_v13, %v355_v12 }
  0x36   : > { %381 = vmatpush.msra.mxu0 %v364_v3 }
  0x37   : > { %v357_v4 = vld [vmem:[#allocation2] sm:$0xff]  ;;  %405 = vadd.xlane.f32.xlu1 %v404_v14 }
  0x38   : > { %696 = vtanh.f32 %v357_v4  ;;  %382 = vmatpush.msra.mxu0 %v363_v5 }
  0x3a   : > { %383 = vmatpush.msra.mxu0 %v362_v6 }
  0x3c   : > { %384 = vmatpush.msra.mxu0 %v361_v7 }
  0x3e   : > { %v697_v8 = vpop.eup %696  ;;  %385 = vmatpush.msra.mxu0 %v360_v9 }
  0x3f   : > { %v391_v10 = vsub.f32 0.0, %v697_v8 }
  0x40   : > { %386 = vmatpush.msra.mxu0 %v359_v11 }
  0x41   : > { %393 = vrot.lane.b32.xlu0 %v391_v10, %s919_s28  ;;  %590 = vmatmul.msk.f32.vlgmr.msra.gmra.mxu0 %vm367_vm1, %v355_v12 }
  0xaa   : > { %v406_v20 = vpop.xlane.xlu1 %405 }
  0xb3   : > { %v394_v15 = vpop.permute.xlu0 %393 }
  0xb4   : > { %v396_v17 = vsel %vm367_vm1, %v356_v16, %v394_v15 }
  0xbe   : > { %v388_v18 = vpop.f32.mrf.mxu0 }
  0xbf   : > { %v397_v19 = vmul.f32 %v396_v17, %v388_v18 }
  0xc1   : > { %398 = vadd.xlane.f32.xlu0 %v397_v19 }
 0x134   : > { %v399_v21 = vpop.xlane.xlu0 %398 }
 0x135   : > { %v407_v22 = vadd.f32 %v406_v20, %v399_v21 }
 0x137   : > { %v591_v23 = vmul.f32 -1.442695, %v407_v22 }
 0x139   : > { %698 = vpow2.f32 %v591_v23 }
 0x13f   : > { %v699_v24 = vpop.eup %698 }
 0x140   : > { %v411_v25 = vadd.f32 1.0, %v699_v24 }
 0x142   : > { %700 = vrcp.f32 %v411_v25  ;;  %v423_v29 = vand.u32 2147483648, %v411_v25  ;;  %v421_v31 = vand.u32 2147483647, %v411_v25  ;;  %vm417_vm3 = vweird.f32 %v411_v25 }
 0x144   : > { %v424_v33 = vor.u32 1.1754944e-38, %v423_v29  ;;  %vm422_vm6 = vcmp.eq.f32.partialorder %v421_v31, 8.507059e+37 }
 0x148   : > { %v701_v26 = vpop.eup %700 }
 0x149   : > { %v413_v27 = vmul.f32 %v701_v26, %v411_v25  ;;  %vm418_vm2 = vweird.f32 %v701_v26 }
 0x14a   : > { %vm419_vm5 = vmor %vm417_vm3, %vm418_vm2 }
 0x14b   : > { %v414_v28 = vsub.f32 1.0, %v413_v27 }
 0x14d   : > { %v415_v30 = vmul.f32 %v701_v26, %v414_v28 }
 0x14f   : > { %v416_v32 = vadd.f32 %v701_v26, %v415_v30 }
 0x151   : > { %v420_v34 = vsel %vm419_vm5, %v701_v26, %v416_v32 }
 0x152   : > { %v425_v35 = vsel %vm422_vm6, %v424_v33, %v420_v34 }
 0x153   : > { %430 = vst.msk [vmem:[%s428_s15] sm:$0xff] %vm429_vm4, %v425_v35  ;;  %v431_v36 = vmul.f32 %v425_v35, %v355_v12  ;;  %437 = sbr.rel (%p593_p1) target bundleno = 352 (0x160), region = 64 }
 0x155   : > { %v432_v37 = vadd.f32 %v431_v36, %v357_v4 }
 0x157   : > { %433 = vst.msk [vmem:[#allocation2] sm:$0xff] %vm367_vm1, %v432_v37 }
 0x15e   : > { %v438_v38 = vld [vmem:[#allocation2] sm:$0xff] }
 0x15f   : > { %439 = vst.msk [vmem:[#allocation11] sm:$0xff] %vm367_vm1, %v438_v38 }
 0x160 PF: > { %p638_p3 = scmp.eq.s32.totalorder %s576_s27, 15  ;;  %s457_s21 = sshll.u32 %s1109_s6, 4  ;;  %s458_s21 = int_to_ptr.hbm [resolvable:$true] %s457_s21 }
 0x161   : > { %s920_s30 = smov [#allocation11]  }
 0x162   : > { %s455_s7 = sshll.u32 %s920_s30, 4  ;;  %s456_s7 = int_to_ptr.vmem [resolvable:$true] %s455_s7 }
 0x163   : > { %614 = dma.vmem_to_hbm [thread:$0]  (%p638_p3), %s456_s7, 128, %s458_s21, [#allocation5]  }
 0x164   : > { %887 = dma.done.wait (%p638_p3), [#allocation5], 128  }
 0x165   : > { %889 = vsyncadd (%p638_p3), [#allocation5], 4294967168 }
 0x166 PF: > { %s23_s26 = sadd.s32 1, %s912_s26   ;;  %s1114_s21 = smov %s896_s22 }
 0x167   : > { %p20_p4 = scmp.ge.s32.totalorder %s23_s26, 18   ;;  %s1115_s22 = smov %s900_s23 }
 0x168   : > { %s1116_s23 = smov %s1040_s18  ;;  %s1117_s24 = smov %s908_s25 }
 0x169   : > { %s1118_s25 = smov %s1120_s13  ;;  %22 = sbr.rel (!%p20_p4) target bundleno = 7 (0x7), region = 113 }
 0x16e   :  { %478 = vsyncpa [#allocation4], 1 }
 0x16f   :  { %480 = vsyncpa [#allocation4 + $0x1], 1 }
 0x170   :  { %481 = vsyncpa [#allocation7], 1 }
 0x171   :  { %482 = vsyncpa [#allocation10], 1 }
 0x172   :  { %483 = vsyncpa [#allocation5], 1 }
 0x173   :  { %485 = vsyncpa [#allocation5 + $0x1], 1 }

</bundles_post_ra>
